<compile_context>
chip_gen: v7x
topology: tpu7x:2x2x1
jax: 0.10.0
libtpu: 0.0.40
codegen_flags: <defaults>
</compile_context>

<pallas_src>
import functools

import jax
import jax.numpy as jnp
from jax.experimental import pallas as pl
from jax.experimental.pallas import tpu as pltpu


def _ce_partial_kernel(n_rows, n_cols, tiles_per_block, tile_n, tile_v,
                       logits_ref,     # (tile_n, tile_v)  native dtype, VMEM
                       tgt_ref,        # (tile_n, 1)       int32,        VMEM
                       out_ref,        # (1, 128)          f32,          VMEM
                       m_ref,          # (tile_n, 1) f32  running row max
                       l_ref,          # (tile_n, 1) f32  running scaled exp-sum
                       tl_ref,         # (tile_n, 1) f32  running target logit
                       acc_sum_ref,    # (tile_n, 1) f32  per-block NLL accumulator
                       acc_cnt_ref):   # (tile_n, 1) f32  per-block valid-row count
    p = pl.program_id(0)
    t = pl.program_id(1)
    kv = pl.program_id(2)
    n_t = pl.num_programs(1)
    n_kv = pl.num_programs(2)

    @pl.when(jnp.logical_and(t == 0, kv == 0))
    def _init_block():
        acc_sum_ref[...] = jnp.zeros_like(acc_sum_ref)
        acc_cnt_ref[...] = jnp.zeros_like(acc_cnt_ref)

    @pl.when(kv == 0)
    def _init_row_tile():
        m_ref[...] = jnp.full_like(m_ref, -jnp.inf)
        l_ref[...] = jnp.zeros_like(l_ref)
        tl_ref[...] = jnp.zeros_like(tl_ref)

    chunk = logits_ref[...]                          # native dtype (bf16 stays bf16)
    tgt = tgt_ref[...]                               # (tile_n, 1) int32

    # (1, tile_v) class-index iota; broadcasts against the (tile_n, 1) targets.
    col = kv * tile_v + jax.lax.broadcasted_iota(jnp.int32, (1, tile_v), 1)

    if n_cols % tile_v != 0:
        # Mask padded vocab columns of the trailing V chunk (native dtype; no
        # f32 full-tile temp). Masked lanes contribute exp(-inf)=0 and never
        # match a target (targets < n_cols).
        chunk = jnp.where(col < n_cols, chunk,
                          jnp.array(-jnp.inf, dtype=chunk.dtype))

    # ---- online softmax update (f32 state, native-dtype tile reads) ----
    m_old = m_ref[...]
    m_chunk = jnp.max(chunk, axis=-1, keepdims=True).astype(jnp.float32)
    m_new = jnp.maximum(m_old, m_chunk)
    scale = jnp.exp(m_old - m_new)                   # exp(-inf - finite) == 0 at kv==0
    p_sum = jnp.sum(jnp.exp(chunk.astype(jnp.float32) - m_new),
                    axis=-1, keepdims=True)          # single fused reduction
    l_ref[...] = l_ref[...] * scale + p_sum
    m_ref[...] = m_new

    # Target logit gathered straight from the native-dtype tile (exact: only one
    # non-zero element per row survives the where-select; f32 accumulation).
    tl_ref[...] += jnp.sum(jnp.where(col == tgt, chunk,
                                     jnp.zeros((), dtype=chunk.dtype)),
                           axis=-1, keepdims=True, dtype=jnp.float32)

    # ---- per-row-tile finalize: fold this tile's NLL into block accumulators ----
    @pl.when(kv == n_kv - 1)
    def _row_tile_finalize():
        nll = (m_ref[...] + jnp.log(l_ref[...])) - tl_ref[...]     # (tile_n, 1)
        row0 = (p * tiles_per_block + t) * tile_n
        row = row0 + jax.lax.broadcasted_iota(jnp.int32, (tile_n, 1), 0)
        valid = jnp.logical_and(tgt != 0, row < n_rows)
        # where-*select* (never multiply): padded/garbage rows may hold inf/NaN.
        acc_sum_ref[...] += jnp.where(valid, nll, 0.0)
        acc_cnt_ref[...] += valid.astype(jnp.float32)

    # ---- block finalize: emit lane-dense partials for the wrapper epilogue ----
    @pl.when(jnp.logical_and(t == n_t - 1, kv == n_kv - 1))
    def _block_finalize():
        ce_sum = jnp.sum(acc_sum_ref[...])
        ce_cnt = jnp.sum(acc_cnt_ref[...])
        lane = jax.lax.broadcasted_iota(jnp.int32, (1, 128), 1)
        out_ref[...] = jnp.where(lane == 0, ce_sum,
                                 jnp.where(lane == 1, ce_cnt, 0.0))


def _vmem_capacity_bytes():
    try:
        info = pltpu.get_tpu_info()
        v = getattr(info, "vmem_capacity_bytes", None)
        if v:
            return int(v)
    except Exception:
        pass
    return 64 * 1024 * 1024     # conservative default (v7x-sized)


def _device_kind():
    try:
        return jax.devices()[0].device_kind.lower()
    except Exception:
        return ""


def mdcspell_loss(correction_outputs, correction_targets,
                  detection_outputs, detection_targets,
                  coefficient=0.85, tile_n=None, tile_v=None, parallel_blocks=None):
    """correction_outputs: (B, S, V) float (f32 or bf16); correction_targets: (B, S) int;
       detection_outputs/targets: (B, S) float (probabilities / {0,1})."""
    B, S, V = correction_outputs.shape
    N = B * S

    logits = correction_outputs.reshape(N, V)                 # keep native dtype
    targets = correction_targets.reshape(N, 1).astype(jnp.int32)
    itemsize = jnp.dtype(logits.dtype).itemsize

    # ---- generation-aware tiling budgets ----
    vmem_cap = _vmem_capacity_bytes()
    if vmem_cap >= 100 * 1024 * 1024:      # v5e / v6e: 128 MiB VMEM per core
        budget, vmem_limit, row_cap = 8 * 1024 * 1024, 80 * 1024 * 1024, 4096
    else:                                   # v7x (64 MiB/TC) or unknown
        budget, vmem_limit, row_cap = 6 * 1024 * 1024, 40 * 1024 * 1024, 1024

    mult = {1: 32, 2: 16}.get(itemsize, 8)  # sublane-packing alignment for tile_n

    if tile_v is None:
        rows_full_v = budget // max(1, V * itemsize)
        if V <= 128 or rows_full_v >= 128:
            tile_v = V                       # whole vocab per step
        else:
            # Very large vocabulary: chunk V (multiple of 128) so row tiles stay
            # >= 128 rows; online softmax handles the V reduction.
            tile_v = max(128, min(((budget // (128 * itemsize)) // 128) * 128,
                                  (V // 128) * 128))
    tile_v = int(min(tile_v, V))

    if tile_n is None:
        tile_n = budget // max(1, tile_v * itemsize)
        tile_n = max(mult, min(row_cap, (tile_n // mult) * mult))
    if N <= tile_n:
        tile_n = N

    num_row_tiles = pl.cdiv(N, tile_n)
    KV = pl.cdiv(V, tile_v)

    # TODO(synk): on v7x, verify in a trace that the leading "parallel" axis is
    # actually sharded across both TensorCores; if not, switch to CORE_PARALLEL.
    if parallel_blocks is None:
        parallel_blocks = 2 if ("v7" in _device_kind() and num_row_tiles >= 2) else 1
    P = max(1, min(int(parallel_blocks), num_row_tiles))
    T = pl.cdiv(num_row_tiles, P)

    def logits_idx(pp, tt, kk):
        # Clamp so the DMA never addresses past the array; over-shot tiles are
        # fully masked inside the kernel via the global-row bound.
        return (jnp.minimum(pp * T + tt, num_row_tiles - 1), kk)

    def tgt_idx(pp, tt, kk):
        return (jnp.minimum(pp * T + tt, num_row_tiles - 1), 0)

    kernel = functools.partial(_ce_partial_kernel, N, V, T, tile_n, tile_v)

    cost = pl.CostEstimate(
        flops=int(5 * N * V),
        transcendentals=int(N * V),
        bytes_accessed=int(N * V * itemsize + N * 4 + P * 128 * 4))

    partials = pl.pallas_call(
        kernel,
        out_shape=jax.ShapeDtypeStruct((P, 128), jnp.float32),
        grid=(P, T, KV),
        in_specs=[
            pl.BlockSpec((tile_n, tile_v), logits_idx),       # logits row/vocab tile
            pl.BlockSpec((tile_n, 1), tgt_idx),               # targets row tile
        ],
        out_specs=pl.BlockSpec((1, 128), lambda pp, tt, kk: (pp, 0)),
        scratch_shapes=[pltpu.VMEM((tile_n, 1), jnp.float32)] * 5,
        compiler_params=pltpu.CompilerParams(
            dimension_semantics=("parallel", "arbitrary", "arbitrary"),
            vmem_limit_bytes=vmem_limit),
        cost_estimate=cost,
    )(logits, targets)

    # ---- tiny scalar epilogue in plain JAX ----
    ce_sum = jnp.sum(partials[:, 0])
    ce_cnt = jnp.sum(partials[:, 1])
    correction_loss = ce_sum / jnp.maximum(ce_cnt, 1.0)

    # BCELoss (mean, probabilities in) over the tiny (B, S) detection tensors —
    # computed in the wrapper (removed from the kernel per review).
    prob = detection_outputs.astype(jnp.float32)
    lbl = detection_targets.astype(jnp.float32)
    log_p = jnp.maximum(jnp.log(prob), -100.0)        # PyTorch BCE log clamp
    log_1mp = jnp.maximum(jnp.log(1.0 - prob), -100.0)
    detection_loss = jnp.mean(-(lbl * log_p + (1.0 - lbl) * log_1mp))

    c = jnp.float32(coefficient)
    return c * correction_loss + (1.0 - c) * detection_loss


def _reference_loss(correction_outputs, correction_targets,
                    detection_outputs, detection_targets, coefficient=0.85):
    B, S, V = correction_outputs.shape
    logits = correction_outputs.reshape(-1, V).astype(jnp.float32)
    tgt = correction_targets.reshape(-1).astype(jnp.int32)
    logp = jax.nn.log_softmax(logits, axis=-1)
    nll = -jnp.take_along_axis(logp, tgt[:, None], axis=1)[:, 0]
    valid = (tgt != 0).astype(jnp.float32)
    ce = jnp.sum(nll * valid) / jnp.maximum(jnp.sum(valid), 1.0)
    p = detection_outputs.astype(jnp.float32)
    t = detection_targets.astype(jnp.float32)
    bce = jnp.mean(-(t * jnp.maximum(jnp.log(p), -100.0)
                     + (1.0 - t) * jnp.maximum(jnp.log(1.0 - p), -100.0)))
    return coefficient * ce + (1.0 - coefficient) * bce


if __name__ == "__main__":
    key = jax.random.PRNGKey(0)
    keys = jax.random.split(key, 12)

    # --- Test 1: small shapes consistent with the module (single-tile path) ---
    B, S, V = 2, 8, 32
    co = jax.random.normal(keys[0], (B, S, V), dtype=jnp.float32)
    ct = jax.random.randint(keys[1], (B, S), 0, V, dtype=jnp.int32)
    do = jax.nn.sigmoid(jax.random.normal(keys[2], (B, S), dtype=jnp.float32))
    dt = jax.random.bernoulli(keys[3], 0.3, (B, S)).astype(jnp.float32)

    loss = mdcspell_loss(co, ct, do, dt, coefficient=0.85)
    loss = jax.block_until_ready(loss)
    ref = _reference_loss(co, ct, do, dt, coefficient=0.85)
    assert jnp.allclose(loss, ref, rtol=1e-5, atol=1e-5), (loss, ref)

    # --- Test 2: bf16 logits, multi-tile, forced 2-block parallel axis,
    #             partial boundary row tile ---
    B2, S2, V2 = 2, 60, 128            # N = 120, tile_n=32 -> 4 tiles, P=2, T=2
    co2 = jax.random.normal(keys[4], (B2, S2, V2), dtype=jnp.float32).astype(jnp.bfloat16)
    ct2 = jax.random.randint(keys[5], (B2, S2), 0, V2, dtype=jnp.int32)
    do2 = jax.nn.sigmoid(jax.random.normal(keys[6], (B2, S2), dtype=jnp.float32))
    dt2 = jax.random.bernoulli(keys[7], 0.3, (B2, S2)).astype(jnp.float32)

    loss2 = mdcspell_loss(co2, ct2, do2, dt2, coefficient=0.85,
                          tile_n=32, parallel_blocks=2)
    loss2 = jax.block_until_ready(loss2)
    ref2 = _reference_loss(co2, ct2, do2, dt2, coefficient=0.85)
    assert jnp.allclose(loss2, ref2, rtol=1e-4, atol=1e-4), (loss2, ref2)

    # --- Test 3: V-chunked online-softmax path (tile_v < V, masked last chunk) ---
    B3, S3, V3 = 2, 16, 320            # KV = 3 chunks of 128 (last chunk masked)
    co3 = jax.random.normal(keys[8], (B3, S3, V3), dtype=jnp.float32)
    ct3 = jax.random.randint(keys[9], (B3, S3), 0, V3, dtype=jnp.int32)
    do3 = jax.nn.sigmoid(jax.random.normal(keys[10], (B3, S3), dtype=jnp.float32))
    dt3 = jax.random.bernoulli(keys[11], 0.3, (B3, S3)).astype(jnp.float32)

    loss3 = mdcspell_loss(co3, ct3, do3, dt3, coefficient=0.85,
                          tile_n=16, tile_v=128)
    loss3 = jax.block_until_ready(loss3)
    ref3 = _reference_loss(co3, ct3, do3, dt3, coefficient=0.85)
    assert jnp.allclose(loss3, ref3, rtol=1e-5, atol=1e-5), (loss3, ref3)

    print("KERNEL_OK")
</pallas_src>

<mosaic_0001>
module attributes {stable_mosaic.version = 11 : i64} {
  func.func @_ce_partial_kernel(%arg0: i32, %arg1: i32, %arg2: i32, %arg3: memref<16x32xf32, #tpu.memory_space<vmem>>, %arg4: memref<16x1xi32, #tpu.memory_space<vmem>>, %arg5: memref<1x128xf32, #tpu.memory_space<vmem>>, %arg6: memref<16x1xf32, #tpu.memory_space<vmem>>, %arg7: memref<16x1xf32, #tpu.memory_space<vmem>>, %arg8: memref<16x1xf32, #tpu.memory_space<vmem>>, %arg9: memref<16x1xf32, #tpu.memory_space<vmem>>, %arg10: memref<16x1xf32, #tpu.memory_space<vmem>>) attributes {dimension_semantics = [#tpu.dimension_semantics<parallel>, #tpu.dimension_semantics<arbitrary>, #tpu.dimension_semantics<arbitrary>], iteration_bounds = array<i64: 1, 1, 1>, scalar_prefetch = 0 : i64, scratch_operands = 5 : i64, tpu.core_type = #tpu.core_type<tc>, window_params = [{transform_indices = @transform_0, window_bounds = array<i64: 16, 32>}, {transform_indices = @transform_1, window_bounds = array<i64: 16, 1>}, {transform_indices = @transform_2, window_bounds = array<i64: 1, 128>}]} {
    %c0_i32 = arith.constant 0 : i32
    %0 = arith.cmpi eq, %arg1, %c0_i32 : i32
    %c0_i32_0 = arith.constant 0 : i32
    %1 = arith.cmpi eq, %arg2, %c0_i32_0 : i32
    %2 = arith.andi %0, %1 : i1
    %3 = arith.extui %2 : i1 to i32
    %c0_i32_1 = arith.constant 0 : i32
    %4 = arith.cmpi ne, %3, %c0_i32_1 : i32
    scf.if %4 {
      %cst_27 = arith.constant 0.000000e+00 : f32
      %48 = vector.broadcast %cst_27 : f32 to vector<16x1xf32>
      %c0_28 = arith.constant 0 : index
      %c0_29 = arith.constant 0 : index
      %49 = vector.load %arg9[%c0_28, %c0_29] : memref<16x1xf32, #tpu.memory_space<vmem>>, vector<16x1xf32>
      tpu.vector_store %arg9[%c0_28, %c0_29], %48 {strides = array<i32>} : memref<16x1xf32, #tpu.memory_space<vmem>>, vector<16x1xf32>,
      %cst_30 = arith.constant 0.000000e+00 : f32
      %50 = vector.broadcast %cst_30 : f32 to vector<16x1xf32>
      %c0_31 = arith.constant 0 : index
      %c0_32 = arith.constant 0 : index
      %51 = vector.load %arg10[%c0_31, %c0_32] : memref<16x1xf32, #tpu.memory_space<vmem>>, vector<16x1xf32>
      tpu.vector_store %arg10[%c0_31, %c0_32], %50 {strides = array<i32>} : memref<16x1xf32, #tpu.memory_space<vmem>>, vector<16x1xf32>,
    } else {
    }
    %c0_i32_2 = arith.constant 0 : i32
    %5 = arith.cmpi eq, %arg2, %c0_i32_2 : i32
    %6 = arith.extui %5 : i1 to i32
    %c0_i32_3 = arith.constant 0 : i32
    %7 = arith.cmpi ne, %6, %c0_i32_3 : i32
    scf.if %7 {
      %cst_27 = arith.constant 0xFF800000 : f32
      %48 = vector.broadcast %cst_27 : f32 to vector<16x1xf32>
      %c0_28 = arith.constant 0 : index
      %c0_29 = arith.constant 0 : index
      %49 = vector.load %arg6[%c0_28, %c0_29] : memref<16x1xf32, #tpu.memory_space<vmem>>, vector<16x1xf32>
      tpu.vector_store %arg6[%c0_28, %c0_29], %48 {strides = array<i32>} : memref<16x1xf32, #tpu.memory_space<vmem>>, vector<16x1xf32>,
      %cst_30 = arith.constant 0.000000e+00 : f32
      %50 = vector.broadcast %cst_30 : f32 to vector<16x1xf32>
      %c0_31 = arith.constant 0 : index
      %c0_32 = arith.constant 0 : index
      %51 = vector.load %arg7[%c0_31, %c0_32] : memref<16x1xf32, #tpu.memory_space<vmem>>, vector<16x1xf32>
      tpu.vector_store %arg7[%c0_31, %c0_32], %50 {strides = array<i32>} : memref<16x1xf32, #tpu.memory_space<vmem>>, vector<16x1xf32>,
      %cst_33 = arith.constant 0.000000e+00 : f32
      %52 = vector.broadcast %cst_33 : f32 to vector<16x1xf32>
      %c0_34 = arith.constant 0 : index
      %c0_35 = arith.constant 0 : index
      %53 = vector.load %arg8[%c0_34, %c0_35] : memref<16x1xf32, #tpu.memory_space<vmem>>, vector<16x1xf32>
      tpu.vector_store %arg8[%c0_34, %c0_35], %52 {strides = array<i32>} : memref<16x1xf32, #tpu.memory_space<vmem>>, vector<16x1xf32>,
    } else {
    }
    %c0 = arith.constant 0 : index
    %c0_4 = arith.constant 0 : index
    %8 = vector.load %arg3[%c0, %c0_4] : memref<16x32xf32, #tpu.memory_space<vmem>>, vector<16x32xf32>
    %c0_5 = arith.constant 0 : index
    %c0_6 = arith.constant 0 : index
    %9 = vector.load %arg4[%c0_5, %c0_6] : memref<16x1xi32, #tpu.memory_space<vmem>>, vector<16x1xi32>
    %c32_i32 = arith.constant 32 : i32
    %10 = arith.muli %arg2, %c32_i32 : i32
    %11 = tpu.iota {dimensions = array<i32: 1>} : vector<1x32xi32>
    %12 = vector.broadcast %10 : i32 to vector<1x32xi32>
    %13 = arith.addi %12, %11 : vector<1x32xi32>
    %c0_7 = arith.constant 0 : index
    %c0_8 = arith.constant 0 : index
    %14 = vector.load %arg6[%c0_7, %c0_8] : memref<16x1xf32, #tpu.memory_space<vmem>>, vector<16x1xf32>
    %cst = arith.constant dense<0xFF800000> : vector<16xf32>
    %15 = vector.multi_reduction <maximumf>, %8, %cst [1] : vector<16x32xf32> to vector<16xf32>
    %16 = vector.shape_cast %15 : vector<16xf32> to vector<16x1xf32>
    %17 = arith.maximumf %14, %16 : vector<16x1xf32>
    %18 = arith.subf %14, %17 : vector<16x1xf32>
    %19 = math.exp %18 : vector<16x1xf32>
    %20 = vector.broadcast %17 : vector<16x1xf32> to vector<16x32xf32>
    %21 = arith.subf %8, %20 : vector<16x32xf32>
    %22 = math.exp %21 : vector<16x32xf32>
    %cst_9 = arith.constant dense<0.000000e+00> : vector<16xf32>
    %23 = vector.multi_reduction <add>, %22, %cst_9 [1] : vector<16x32xf32> to vector<16xf32>
    %24 = vector.shape_cast %23 : vector<16xf32> to vector<16x1xf32>
    %c0_10 = arith.constant 0 : index
    %c0_11 = arith.constant 0 : index
    %25 = vector.load %arg7[%c0_10, %c0_11] : memref<16x1xf32, #tpu.memory_space<vmem>>, vector<16x1xf32>
    %26 = arith.mulf %25, %19 : vector<16x1xf32>
    %27 = arith.addf %26, %24 : vector<16x1xf32>
    %c0_12 = arith.constant 0 : index
    %c0_13 = arith.constant 0 : index
    %28 = vector.load %arg7[%c0_12, %c0_13] : memref<16x1xf32, #tpu.memory_space<vmem>>, vector<16x1xf32>
    tpu.vector_store %arg7[%c0_12, %c0_13], %27 {strides = array<i32>} : memref<16x1xf32, #tpu.memory_space<vmem>>, vector<16x1xf32>,
    %c0_14 = arith.constant 0 : index
    %c0_15 = arith.constant 0 : index
    %29 = vector.load %arg6[%c0_14, %c0_15] : memref<16x1xf32, #tpu.memory_space<vmem>>, vector<16x1xf32>
    tpu.vector_store %arg6[%c0_14, %c0_15], %17 {strides = array<i32>} : memref<16x1xf32, #tpu.memory_space<vmem>>, vector<16x1xf32>,
    %c0_16 = arith.constant 0 : index
    %c0_17 = arith.constant 0 : index
    %30 = vector.load %arg8[%c0_16, %c0_17] : memref<16x1xf32, #tpu.memory_space<vmem>>, vector<16x1xf32>
    %31 = vector.broadcast %13 : vector<1x32xi32> to vector<16x32xi32>
    %32 = vector.broadcast %9 : vector<16x1xi32> to vector<16x32xi32>
    %33 = arith.cmpi eq, %31, %32 : vector<16x32xi32>
    %cst_18 = arith.constant 0.000000e+00 : f32
    %34 = vector.broadcast %cst_18 : f32 to vector<16x32xf32>
    %35 = arith.select %33, %8, %34 : vector<16x32xi1>, vector<16x32xf32>
    %cst_19 = arith.constant dense<0.000000e+00> : vector<16xf32>
    %36 = vector.multi_reduction <add>, %35, %cst_19 [1] : vector<16x32xf32> to vector<16xf32>
    %37 = vector.shape_cast %36 : vector<16xf32> to vector<16x1xf32>
    %38 = arith.addf %30, %37 : vector<16x1xf32>
    %c0_20 = arith.constant 0 : index
    %c0_21 = arith.constant 0 : index
    %39 = vector.load %arg8[%c0_20, %c0_21] : memref<16x1xf32, #tpu.memory_space<vmem>>, vector<16x1xf32>
    tpu.vector_store %arg8[%c0_20, %c0_21], %38 {strides = array<i32>} : memref<16x1xf32, #tpu.memory_space<vmem>>, vector<16x1xf32>,
    %c0_i32_22 = arith.constant 0 : i32
    %40 = arith.cmpi eq, %arg2, %c0_i32_22 : i32
    %41 = arith.extui %40 : i1 to i32
    %c0_i32_23 = arith.constant 0 : i32
    %42 = arith.cmpi ne, %41, %c0_i32_23 : i32
    scf.if %42 {
      %c0_27 = arith.constant 0 : index
      %c0_28 = arith.constant 0 : index
      %48 = vector.load %arg6[%c0_27, %c0_28] : memref<16x1xf32, #tpu.memory_space<vmem>>, vector<16x1xf32>
      %c0_29 = arith.constant 0 : index
      %c0_30 = arith.constant 0 : index
      %49 = vector.load %arg7[%c0_29, %c0_30] : memref<16x1xf32, #tpu.memory_space<vmem>>, vector<16x1xf32>
      %50 = math.log %49 : vector<16x1xf32>
      %51 = arith.addf %48, %50 : vector<16x1xf32>
      %c0_31 = arith.constant 0 : index
      %c0_32 = arith.constant 0 : index
      %52 = vector.load %arg8[%c0_31, %c0_32] : memref<16x1xf32, #tpu.memory_space<vmem>>, vector<16x1xf32>
      %53 = arith.subf %51, %52 : vector<16x1xf32>
      %c1_i32 = arith.constant 1 : i32
      %54 = arith.muli %arg0, %c1_i32 : i32
      %55 = arith.addi %54, %arg1 : i32
      %c16_i32 = arith.constant 16 : i32
      %56 = arith.muli %55, %c16_i32 : i32
      %57 = tpu.iota {dimensions = array<i32: 0>} : vector<16x1xi32>
      %58 = vector.broadcast %56 : i32 to vector<16x1xi32>
      %59 = arith.addi %58, %57 : vector<16x1xi32>
      %c0_i32_33 = arith.constant 0 : i32
      %60 = vector.broadcast %c0_i32_33 : i32 to vector<16x1xi32>
      %61 = arith.cmpi ne, %9, %60 : vector<16x1xi32>
      %c16_i32_34 = arith.constant 16 : i32
      %62 = vector.broadcast %c16_i32_34 : i32 to vector<16x1xi32>
      %63 = arith.cmpi slt, %59, %62 : vector<16x1xi32>
      %64 = arith.andi %61, %63 : vector<16x1xi1>
      %c0_35 = arith.constant 0 : index
      %c0_36 = arith.constant 0 : index
      %65 = vector.load %arg9[%c0_35, %c0_36] : memref<16x1xf32, #tpu.memory_space<vmem>>, vector<16x1xf32>
      %cst_37 = arith.constant 0.000000e+00 : f32
      %66 = vector.broadcast %cst_37 : f32 to vector<16x1xf32>
      %67 = arith.select %64, %53, %66 : vector<16x1xi1>, vector<16x1xf32>
      %68 = arith.addf %65, %67 : vector<16x1xf32>
      %c0_38 = arith.constant 0 : index
      %c0_39 = arith.constant 0 : index
      %69 = vector.load %arg9[%c0_38, %c0_39] : memref<16x1xf32, #tpu.memory_space<vmem>>, vector<16x1xf32>
      tpu.vector_store %arg9[%c0_38, %c0_39], %68 {strides = array<i32>} : memref<16x1xf32, #tpu.memory_space<vmem>>, vector<16x1xf32>,
      %c0_40 = arith.constant 0 : index
      %c0_41 = arith.constant 0 : index
      %70 = vector.load %arg10[%c0_40, %c0_41] : memref<16x1xf32, #tpu.memory_space<vmem>>, vector<16x1xf32>
      %71 = arith.extui %64 : vector<16x1xi1> to vector<16x1xi32>
      %72 = arith.sitofp %71 : vector<16x1xi32> to vector<16x1xf32>
      %73 = arith.addf %70, %72 : vector<16x1xf32>
      %c0_42 = arith.constant 0 : index
      %c0_43 = arith.constant 0 : index
      %74 = vector.load %arg10[%c0_42, %c0_43] : memref<16x1xf32, #tpu.memory_space<vmem>>, vector<16x1xf32>
      tpu.vector_store %arg10[%c0_42, %c0_43], %73 {strides = array<i32>} : memref<16x1xf32, #tpu.memory_space<vmem>>, vector<16x1xf32>,
    } else {
    }
    %c0_i32_24 = arith.constant 0 : i32
    %43 = arith.cmpi eq, %arg1, %c0_i32_24 : i32
    %c0_i32_25 = arith.constant 0 : i32
    %44 = arith.cmpi eq, %arg2, %c0_i32_25 : i32
    %45 = arith.andi %43, %44 : i1
    %46 = arith.extui %45 : i1 to i32
    %c0_i32_26 = arith.constant 0 : i32
    %47 = arith.cmpi ne, %46, %c0_i32_26 : i32
    scf.if %47 {
      %c0_27 = arith.constant 0 : index
      %c0_28 = arith.constant 0 : index
      %48 = vector.load %arg9[%c0_27, %c0_28] : memref<16x1xf32, #tpu.memory_space<vmem>>, vector<16x1xf32>
      %49 = vector.shape_cast %48 : vector<16x1xf32> to vector<1x16x1xf32>
      %cst_29 = arith.constant dense<0.000000e+00> : vector<1xf32>
      %50 = vector.multi_reduction <add>, %49, %cst_29 [1, 2] : vector<1x16x1xf32> to vector<1xf32>
      %51 = vector.shape_cast %50 : vector<1xf32> to vector<1x1x1xf32>
      %52 = vector.extract %51[0, 0, 0] : f32 from vector<1x1x1xf32>
      %c0_30 = arith.constant 0 : index
      %c0_31 = arith.constant 0 : index
      %53 = vector.load %arg10[%c0_30, %c0_31] : memref<16x1xf32, #tpu.memory_space<vmem>>, vector<16x1xf32>
      %54 = vector.shape_cast %53 : vector<16x1xf32> to vector<1x16x1xf32>
      %cst_32 = arith.constant dense<0.000000e+00> : vector<1xf32>
      %55 = vector.multi_reduction <add>, %54, %cst_32 [1, 2] : vector<1x16x1xf32> to vector<1xf32>
      %56 = vector.shape_cast %55 : vector<1xf32> to vector<1x1x1xf32>
      %57 = vector.extract %56[0, 0, 0] : f32 from vector<1x1x1xf32>
      %58 = tpu.iota {dimensions = array<i32: 1>} : vector<1x128xi32>
      %c0_i32_33 = arith.constant 0 : i32
      %59 = vector.broadcast %c0_i32_33 : i32 to vector<1x128xi32>
      %60 = arith.cmpi eq, %58, %59 : vector<1x128xi32>
      %c1_i32 = arith.constant 1 : i32
      %61 = vector.broadcast %c1_i32 : i32 to vector<1x128xi32>
      %62 = arith.cmpi eq, %58, %61 : vector<1x128xi32>
      %cst_34 = arith.constant 0.000000e+00 : f32
      %63 = vector.broadcast %57 : f32 to vector<1x128xf32>
      %64 = vector.broadcast %cst_34 : f32 to vector<1x128xf32>
      %65 = arith.select %62, %63, %64 : vector<1x128xi1>, vector<1x128xf32>
      %66 = vector.broadcast %52 : f32 to vector<1x128xf32>
      %67 = arith.select %60, %66, %65 : vector<1x128xi1>, vector<1x128xf32>
      %c0_35 = arith.constant 0 : index
      %c0_36 = arith.constant 0 : index
      %68 = vector.load %arg5[%c0_35, %c0_36] : memref<1x128xf32, #tpu.memory_space<vmem>>, vector<1x128xf32>
      tpu.vector_store %arg5[%c0_35, %c0_36], %67 {strides = array<i32>} : memref<1x128xf32, #tpu.memory_space<vmem>>, vector<1x128xf32>,
    } else {
    }
    return
  }
  func.func @transform_0(%arg0: i32, %arg1: i32, %arg2: i32) -> (i32, i32) {
    %c1_i32 = arith.constant 1 : i32
    %0 = arith.muli %arg0, %c1_i32 : i32
    %1 = arith.addi %0, %arg1 : i32
    %c0_i32 = arith.constant 0 : i32
    %2 = arith.minsi %1, %c0_i32 : i32
    %c0_i32_0 = arith.constant 0 : i32
    return %2, %arg2 : i32, i32
  }
  func.func @transform_1(%arg0: i32, %arg1: i32, %arg2: i32) -> (i32, i32) {
    %c1_i32 = arith.constant 1 : i32
    %0 = arith.muli %arg0, %c1_i32 : i32
    %1 = arith.addi %0, %arg1 : i32
    %c0_i32 = arith.constant 0 : i32
    %2 = arith.minsi %1, %c0_i32 : i32
    %c0_i32_0 = arith.constant 0 : i32
    %c0_i32_1 = arith.constant 0 : i32
    return %2, %c0_i32_0 : i32, i32
  }
  func.func @transform_2(%arg0: i32, %arg1: i32, %arg2: i32) -> (i32, i32) {
    %c0_i32 = arith.constant 0 : i32
    %c0_i32_0 = arith.constant 0 : i32
    return %arg0, %c0_i32 : i32, i32
  }
}

</mosaic_0001>

<bundles_post_ra>
// kernel: tpu_custom_call.1
= control target key start
LH: loop header
LB: loop body
LE: loop exit
PB: predicated region body
PF: predicated region fallthrough
CT: control target
= control target key end

     0   :  { %vm108_vm0 = vcmask 261120   ;;  %s438_s0 = inlined_call_operand.vmem [shape: f32[16,32], index: 0, kind: input, shape index: {}]   ;;  %s439_s1 = inlined_call_operand.vmem [shape: s32[16,1], index: 1, kind: input, shape index: {}]   ;;  %s440_s2 = inlined_call_operand.hbm [shape: f32[1,128], index: 2, kind: output, shape index: {}]  }
   0x1   :  { %v97_v0 = vld [vmem:[%s438_s0] sm:$0xff]  ;;  %v363_v1 = vld [vmem:[%s438_s0 + $0x8] sm:$0xff] }
   0x2   :  { %7 = vsyncpa [#allocation8], 0  ;;  %v109_v2 = vsel %vm108_vm0, %v97_v0, -inf  ;;  %v112_v3 = vsel %vm108_vm0, %v363_v1, -inf  ;;  %vm82_vm1 = vcmask 7168   ;;  %v338_v4 = vmov -inf  }
   0x3   :  { %110 = vmax.xlane.f32.xlu0 %v109_v2  ;;  %91 = vst.msk [vmem:[#allocation2] sm:$0xff] %vm82_vm1, %v338_v4  ;;  %92 = vst.msk [vmem:[#allocation2 + $0x8] sm:$0xff] %vm82_vm1, %v338_v4  ;;  %v339_v5 = vmov 0   ;;  %v340_v6 = vmov 0.0   ;;  %v381_v7 = vld [vmem:[%s439_s1 + $0x8] sm:$0xff]  ;;  %v387_v8 = vld [vmem:[%s439_s1] sm:$0xff]  ;;  %v102_v23 = vlaneseq }
   0x4   :  { %300 = vset.pattern.permute.xlu1 %v339_v5  ;;  %301 = vset.pattern.permute.xlu0 %v339_v5  ;;  %86 = vst.msk [vmem:[#allocation6 + $0x8] sm:$0xff] %vm82_vm1, %v340_v6  ;;  %83 = vst.msk [vmem:[#allocation5] sm:$0xff] %vm82_vm1, %v340_v6  ;;  %vm204_vm2 = vcmp.ne.s32.totalorder %v381_v7, 0  ;;  %vm203_vm3 = vcmp.ne.s32.totalorder %v387_v8, 0  ;;  %s341_s16 = smov [#allocation7]  }
   0x5   :  { %84 = vst.msk [vmem:[#allocation5 + $0x8] sm:$0xff] %vm82_vm1, %v340_v6  ;;  %85 = vst.msk [vmem:[#allocation6] sm:$0xff] %vm82_vm1, %v340_v6  ;;  %v291_v9 = vsel %vm204_vm2, 1.0, %v340_v6  ;;  %v290_v10 = vsel %vm203_vm3, 1.0, %v340_v6  ;;  %v400_v24 = vand.u32 127, %v102_v23  ;;  %s270_s17 = sshll.u32 %s341_s16, 4  ;;  %s271_s17 = int_to_ptr.vmem [resolvable:$true] %s270_s17 }
   0x6   :  { %93 = vst.msk [vmem:[#allocation3] sm:$0xff] %vm82_vm1, %v340_v6  ;;  %94 = vst.msk [vmem:[#allocation3 + $0x8] sm:$0xff] %vm82_vm1, %v340_v6  ;;  %s314_s19 = scalar_lea.vmem %s271_s17, 16  ;;  %s318_s20 = scalar_lea.vmem %s271_s17, 32 }
   0x7   :  { %113 = vmax.xlane.f32.xlu0 %v112_v3  ;;  %95 = vst.msk [vmem:[#allocation4] sm:$0xff] %vm82_vm1, %v340_v6  ;;  %96 = vst.msk [vmem:[#allocation4 + $0x8] sm:$0xff] %vm82_vm1, %v340_v6  ;;  %vm258_vm6 = vcmp.eq.s32.totalorder %v400_v24, 1  ;;  %vm257_vm7 = vcmp.eq.s32.totalorder %v400_v24, 0  ;;  %p315_p0 = scmp.ne.s32.totalorder %s271_s17, %s314_s19  ;;  %p319_p1 = scmp.lt.s32.totalorder %s271_s17, %s271_s17 }
   0x8   :  { %p320_p2 = scmp.lt.s32.totalorder %s318_s20, %s314_s19 }
   0xa   :  { %v106_v15 = vld [vmem:[#allocation2] sm:$0xff]  ;;  %v107_v18 = vld [vmem:[#allocation2 + $0x8] sm:$0xff]  ;;  %p321_p3 = por %p320_p2, %p319_p1 }
   0xb   :  { %v218_v11 = vld [vmem:[#allocation6 + $0x8] sm:$0xff]  ;;  %v209_v5 = vld [vmem:[#allocation5] sm:$0xff] }
   0xc   :  { %v217_v12 = vld [vmem:[#allocation6] sm:$0xff]  ;;  %v224_v13 = vadd.f32 %v291_v9, %v218_v11  ;;  %p322_p4 = pnand %p321_p3, %p315_p0 }
   0xd   :  { %v223_v14 = vadd.f32 %v290_v10, %v217_v12  ;;  %v145_v47 = vld [vmem:[#allocation3] sm:$0xff]  ;;  %v146_v51 = vld [vmem:[#allocation3 + $0x8] sm:$0xff] }
   0xe   :  { %226 = vst.msk [vmem:[#allocation6 + $0x8] sm:$0xff] %vm82_vm1, %v224_v13  ;;  %v156_v42 = vld [vmem:[#allocation4] sm:$0xff]  ;;  %v157_v56 = vld [vmem:[#allocation4 + $0x8] sm:$0xff] }
   0xf   :  { %225 = vst.msk [vmem:[#allocation6] sm:$0xff] %vm82_vm1, %v223_v14  ;;  %v210_v14 = vld [vmem:[#allocation5 + $0x8] sm:$0xff] }
  0x1d   :  { %159 = vperm.xlu0 %301, %v387_v8  }
  0x90   :  { %v111_v16 = vpop.xlane.xlu0 %110 }
  0x91   :  { %v115_v17 = vmax.f32 %v106_v15, %v111_v16 }
  0x93   :  { %v117_v19 = vsub.f32 %v106_v15, %v115_v17  ;;  %154 = vst.msk [vmem:[#allocation2] sm:$0xff] %vm82_vm1, %v115_v17  ;;  %125 = vperm.xlu1 %300, %v115_v17  }
  0x94   :  { %v114_v20 = vpop.xlane.xlu0 %113 }
  0x95   :  { %v116_v21 = vmax.f32 %v107_v18, %v114_v20  ;;  %v119_v44 = vmul.f32 1.442695, %v117_v19  ;;  %v244_v19 = vld [vmem:[#allocation6 + $0x8] sm:$0xff] }
  0x96   :  { %v246_v23 = vsel %vm82_vm1, %v244_v19, 0.0 }
  0x97   :  { %v118_v22 = vsub.f32 %v107_v18, %v116_v21  ;;  %155 = vst.msk [vmem:[#allocation2 + $0x8] sm:$0xff] %vm82_vm1, %v116_v21  ;;  %130 = vperm.xlu1 %300, %v116_v21   ;;  %v243_v18 = vld [vmem:[#allocation6] sm:$0xff] }
  0x99   :  { %v121_v45 = vmul.f32 1.442695, %v118_v22  ;;  %v245_v22 = vsel %vm82_vm1, %v243_v18, 0.0 }
  0x9a   :  { %v181_v63 = vld [vmem:[#allocation2] sm:$0xff] }
  0x9b   :  { %162 = vperm.xlu1 %300, %v381_v7  }
  0x9c   :  { %v160_v25 = vpop.permute.xlu0 %159 }
  0x9d   :  { %vm164_vm4 = vcmp.eq.s32.totalorder %v400_v24, %v160_v25 }
  0x9e   :  { %v166_v26 = vsel %vm164_vm4, %v97_v0, 0.0  ;;  %v182_v6 = vld [vmem:[#allocation2 + $0x8] sm:$0xff] }
  0x9f   :  { %v168_v27 = vsel %vm108_vm0, %v166_v26, 0.0  ;;  %v247_v26 = vadd.f32 %v246_v23, %v245_v22 }
  0xa0   :  { %169 = vadd.xlane.f32.xlu0 %v168_v27 }
 0x112   :  { %v126_v28 = vpop.permute.xlu1 %125 }
 0x113   :  { %v133_v29 = vsub.f32 %v97_v0, %v126_v28 }
 0x115   :  { %v135_v30 = vmul.f32 1.442695, %v133_v29 }
 0x116   :  { %v131_v31 = vpop.permute.xlu1 %130 }
 0x117   :  { %302 = vpow2.f32 %v135_v30  ;;  %v134_v32 = vsub.f32 %v363_v1, %v131_v31 }
 0x119   :  { %v137_v33 = vmul.f32 1.442695, %v134_v32 }
 0x11a   :  { %v163_v35 = vpop.permute.xlu1 %162 }
 0x11b   :  { %304 = vpow2.f32 %v137_v33  ;;  %vm165_vm5 = vcmp.eq.s32.totalorder %v400_v24, %v163_v35 }
 0x11c   :  { %v167_v39 = vsel %vm165_vm5, %v363_v1, 0.0  ;;  %306 = vpow2.f32 %v119_v44 }
 0x11d   :  { %v171_v40 = vsel %vm108_vm0, %v167_v39, 0.0  ;;  %308 = vpow2.f32 %v121_v45 }
 0x121   :  { %v303_v34 = vpop.eup %302 }
 0x122   :  { %v139_v36 = vsel %vm108_vm0, %v303_v34, 0.0 }
 0x123   :  { %140 = vadd.xlane.f32.xlu1 %v139_v36 }
 0x125   :  { %v305_v37 = vpop.eup %304 }
 0x126   :  { %v142_v38 = vsel %vm108_vm0, %v305_v37, 0.0  ;;  %v307_v46 = vpop.eup %306 }
 0x127   :  { %143 = vadd.xlane.f32.xlu1 %v142_v38  ;;  %v147_v48 = vmul.f32 %v307_v46, %v145_v47  ;;  %v309_v49 = vpop.eup %308 }
 0x128   :  { %v148_v53 = vmul.f32 %v309_v49, %v146_v51 }
 0x12b   :  { %172 = vadd.xlane.f32.xlu1 %v171_v40 }
 0x12d   :  { %v170_v41 = vpop.xlane.xlu0 %169 }
 0x12e   :  { %v174_v43 = vadd.f32 %v170_v41, %v156_v42 }
 0x130   :  { %176 = vst.msk [vmem:[#allocation4] sm:$0xff] %vm82_vm1, %v174_v43 }
 0x137   :  { %v191_v0 = vld [vmem:[#allocation4] sm:$0xff] }
 0x1b0   :  { %v141_v50 = vpop.xlane.xlu1 %140 }
 0x1b1   :  { %v149_v52 = vadd.f32 %v147_v48, %v141_v50 }
 0x1b3   :  { %152 = vst.msk [vmem:[#allocation3] sm:$0xff] %vm82_vm1, %v149_v52 }
 0x1b4   :  { %v144_v54 = vpop.xlane.xlu1 %143 }
 0x1b5   :  { %v150_v55 = vadd.f32 %v148_v53, %v144_v54 }
 0x1b7   :  { %153 = vst.msk [vmem:[#allocation3 + $0x8] sm:$0xff] %vm82_vm1, %v150_v55 }
 0x1b8   :  { %v173_v57 = vpop.xlane.xlu1 %172 }
 0x1b9   :  { %v175_v58 = vadd.f32 %v173_v57, %v157_v56 }
 0x1ba   :  { %v183_v59 = vld [vmem:[#allocation3] sm:$0xff] }
 0x1bb   :  { %310 = vlog2.f32 %v183_v59  ;;  %177 = vst.msk [vmem:[#allocation4 + $0x8] sm:$0xff] %vm82_vm1, %v175_v58 }
 0x1be   :  { %v184_v60 = vld [vmem:[#allocation3 + $0x8] sm:$0xff] }
 0x1bf   :  { %312 = vlog2.f32 %v184_v60 }
 0x1c2   :  { %v192_v11 = vld [vmem:[#allocation4 + $0x8] sm:$0xff] }
 0x1c5   :  { %v311_v61 = vpop.eup %310 }
 0x1c6   :  { %v186_v62 = vmul.f32 0.6931472, %v311_v61 }
 0x1c8   :  { %v189_v1 = vadd.f32 %v186_v62, %v181_v63 }
 0x1c9   :  { %v313_v2 = vpop.eup %312 }
 0x1ca   :  { %v188_v3 = vmul.f32 0.6931472, %v313_v2  ;;  %v193_v4 = vsub.f32 %v189_v1, %v191_v0 }
 0x1cc   :  { %v190_v9 = vadd.f32 %v188_v3, %v182_v6  ;;  %v211_v10 = vsel %vm203_vm3, %v193_v4, 0.0 }
 0x1cd   :  { %v213_v12 = vadd.f32 %v211_v10, %v209_v5 }
 0x1ce   :  { %v194_v13 = vsub.f32 %v190_v9, %v192_v11 }
 0x1cf   :  { %215 = vst.msk [vmem:[#allocation5] sm:$0xff] %vm82_vm1, %v213_v12 }
 0x1d0   :  { %v212_v15 = vsel %vm204_vm2, %v194_v13, 0.0 }
 0x1d1   :  { %v214_v16 = vadd.f32 %v212_v15, %v210_v14 }
 0x1d3   :  { %216 = vst.msk [vmem:[#allocation5 + $0x8] sm:$0xff] %vm82_vm1, %v214_v16 }
 0x1d6   :  { %v229_v17 = vld [vmem:[#allocation5] sm:$0xff] }
 0x1d7   :  { %v231_v21 = vsel %vm82_vm1, %v229_v17, 0.0 }
 0x1da   :  { %v230_v20 = vld [vmem:[#allocation5 + $0x8] sm:$0xff] }
 0x1db   :  { %v232_v8 = vsel %vm82_vm1, %v230_v20, 0.0 }
 0x1dc   :  { %v233_v25 = vadd.f32 %v232_v8, %v231_v21 }
 0x1de   :  { %234 = vadd.xlane.f32.xlu1 %v233_v25 }
 0x1e2   :  { %248 = vadd.xlane.f32.xlu1 %v247_v26 }
 0x26b   :  { %v235_v7 = vpop.xlane.xlu1 %234 }
 0x26c   :  { %v236_v27 = vrot.slane %v235_v7, 4 }
 0x26e   :  { %v237_v28 = vadd.f32 %v236_v27, %v235_v7 }
 0x26f   :  { %v249_v29 = vpop.xlane.xlu1 %248 }
 0x270   :  { %v238_v30 = vrot.slane %v237_v28, 2  ;;  %v250_v31 = vrot.slane %v249_v29, 4 }
 0x272   :  { %v251_v32 = vadd.f32 %v250_v31, %v249_v29  ;;  %v239_v33 = vadd.f32 %v238_v30, %v237_v28 }
 0x274   :  { %v252_v34 = vrot.slane %v251_v32, 2  ;;  %v240_v35 = vrot.slane %v239_v33, 1 }
 0x276   :  { %v253_v36 = vadd.f32 %v252_v34, %v251_v32  ;;  %v241_v37 = vadd.f32 %v240_v35, %v239_v33 }
 0x278   :  { %292 = vpush %v241_v37  ;;  %v254_v38 = vrot.slane %v253_v36, 1 }
 0x27a   :  { %v255_v39 = vadd.f32 %v254_v38, %v253_v36 }
 0x27c   :  { %294 = vpush %v255_v39 }
 0x2a9   :  { %s293_s1 = spop %292 }
 0x2aa   :  { %v261_v41 = vstv %s293_s1 }
 0x2ad   :  { %s295_s18 = spop %294 }
 0x2ae   :  { %v259_v40 = vstv %s295_s18 }
 0x2af   :  { %v260_v42 = vsel %vm258_vm6, %v259_v40, 0.0 }
 0x2b0   :  { %v262_v43 = vsel %vm257_vm7, %v261_v41, %v260_v42 }
 0x2b1   :  { %263 = vst [vmem:[#allocation7] sm:$0x1] %v262_v43 }
 0x2b2   :  { %325 = shalt.err (!%p322_p4)
}
 0x2b3   :  { %s326_s23 = scalar_lea.hbm %s440_s2, 16 }
 0x2b4   :  { %p327_p5 = scmp.ne.s32.totalorder %s440_s2, %s326_s23  ;;  %p330_p6 = scmp.lt.u32.totalorder %s326_s23, %s440_s2 }
 0x2b6   :  { %p332_p7 = pnand %p330_p6, %p327_p5 }
 0x2b8   :  { %335 = shalt.err (!%p332_p7)
}
 0x2b9   :  { %273 = dma.vmem_to_hbm [thread:$0]  %s271_s17, 16, %s440_s2, [#allocation8]  }
 0x2ba   :  { %336 = dma.done.wait [#allocation8], 16  }
 0x2bb   :  { %337 = vsyncadd [#allocation8], 4294967280 }
 0x2bc   :  { %277 = vsyncpa [#allocation8], 1 }

</bundles_post_ra>
